<compile_context>
chip_gen: v6e
topology: v6e:2x2x1
jax: 0.10.0
libtpu: 0.0.40
codegen_flags: <defaults>
</compile_context>

<pallas_src>
import functools

import numpy as np

import jax
import jax.numpy as jnp
from jax.experimental import pallas as pl
from jax.experimental.pallas import tpu as pltpu


def _vmem_capacity_bytes():
    """Per-core VMEM capacity, with a conservative (v7x-sized) fallback."""
    try:
        info = pltpu.get_tpu_info()
        cap = int(getattr(info, "vmem_capacity_bytes", 0) or 0)
        if cap > 0:
            return cap
    except Exception:
        pass
    return 64 << 20  # v7x per-TensorCore VMEM — smallest current generation


def _aggregate_kernel(rows_ref, cols_ref, first_ref, real_ref,
                      a_ref, x_hbm_ref, o_ref, x_vmem,
                      *, tk, entries_per_part):
    """One block-CSR entry of out = A @ x.

    rows/cols/first/real : SMEM int32 [num_parts * entries_per_part]
    a_ref  : VMEM bf16 [tm, tk]  current A block (gathered via index_map)
    x_hbm  : ANY  bf16 [K, D]    full embedding matrix (left in place)
    o_ref  : VMEM f32  [tm, D]   output tile, resident while row-block unchanged
    x_vmem : VMEM bf16 [K, D]    single-buffered resident copy of x
    """
    p = pl.program_id(0)   # nnz-balanced part (megacore "parallel" axis)
    t = pl.program_id(1)   # entry within the part ("arbitrary" axis)
    idx = p * entries_per_part + t

    # Copy x into VMEM once per core (single buffer => half the footprint of
    # letting BlockSpec double-buffer a constant-index input).
    @pl.when(t == 0)
    def _load_x():
        pltpu.sync_copy(x_hbm_ref, x_vmem)

    # Zero the output tile on the first entry of each row-block.
    @pl.when(first_ref[idx] == 1)
    def _init():
        o_ref[...] = jnp.zeros_like(o_ref)

    # Only real (non-padding / non-dummy) blocks contribute.
    @pl.when(real_ref[idx] == 1)
    def _acc():
        c = cols_ref[idx]
        start = pl.multiple_of(c * tk, tk)
        o_ref[...] += jnp.dot(
            a_ref[...], x_vmem[pl.ds(start, tk), :],
            preferred_element_type=jnp.float32,
        )


class AggregatorHyp:
    """Pallas port of Aggregator_hyp: forward(x) = A_in @ x.

    dropout / manifold are stored for API parity but (as in the PyTorch
    module) never used in forward.  All expensive preprocessing of the
    constant graph happens once here, not per forward call.
    """

    def __init__(self, A_in, dropout=0.0, manifold=None, *, tm=512, tk=512,
                 num_parts=2):
        self.dropout = dropout      # unused in forward (parity with PyTorch)
        self.manifold = manifold    # unused in forward (parity with PyTorch)

        g_np = np.asarray(A_in, dtype=np.float32)       # one-time host copy
        N, K = g_np.shape
        tm = min(tm, N)
        tk = min(tk, K)
        assert N % tm == 0 and K % tk == 0, "shapes must tile evenly for this demo"
        assert tm % 8 == 0 and tk % 128 == 0, "tiles must respect (8, 128) layout"
        self._N, self._K, self._tm, self._tk = N, K, tm, tk
        nrb, nkb = N // tm, K // tk

        # ---- block-CSR metadata (host, once) ------------------------------
        blk_nnz = np.abs(g_np).reshape(nrb, tm, nkb, tk).max(axis=(1, 3)) > 0.0
        per_row = []                                   # (row, col, is_first, is_real)
        for r in range(nrb):
            nz = np.nonzero(blk_nnz[r])[0]
            if nz.size == 0:
                # Dummy entry: its output tile still gets zeroed, no matmul.
                per_row.append([(r, 0, 1, 0)])
            else:
                per_row.append([(r, int(c), 1 if j == 0 else 0, 1)
                                for j, c in enumerate(nz)])

        # Balance whole row-blocks over `num_parts` by nnz-block count: the
        # leading "parallel" grid axis feeds both TensorCores on v7x and is
        # harmless (two sequential halves) on single-core v5e/v6e.
        num_parts = max(1, min(num_parts, nrb))
        order = sorted(range(nrb), key=lambda r: -len(per_row[r]))
        assign = [[] for _ in range(num_parts)]
        loads = [0] * num_parts
        for r in order:
            pid = int(np.argmin(loads))
            assign[pid].append(r)
            loads[pid] += len(per_row[r])
        parts = []
        for pid in range(num_parts):
            ents = []
            for r in sorted(assign[pid]):              # keep rows contiguous & ordered
                ents.extend(per_row[r])
            parts.append(ents)
        T = max(len(p) for p in parts)
        rows, cols, first, real = [], [], [], []
        for ents in parts:
            # Padding repeats the last block -> no extra DMA, gated off by real=0.
            padded = ents + [(ents[-1][0], ents[-1][1], 0, 0)] * (T - len(ents))
            for (r, c, f, rl) in padded:
                rows.append(r); cols.append(c); first.append(f); real.append(rl)
        self._num_parts, self._entries_per_part = num_parts, T
        self._rows = jnp.asarray(np.array(rows, dtype=np.int32))
        self._cols = jnp.asarray(np.array(cols, dtype=np.int32))
        self._first = jnp.asarray(np.array(first, dtype=np.int32))
        self._real = jnp.asarray(np.array(real, dtype=np.int32))

        # One-time bf16 cast of A (halves the dominant HBM traffic; the kernel
        # accumulates in f32 on the MXU).
        self._graph_bf16 = jnp.asarray(g_np, dtype=jnp.bfloat16)

        self._calls = {}   # pallas_call cache keyed by embedding dim D

    # ------------------------------------------------------------------ #

    def _get_call(self, D):
        if D in self._calls:
            return self._calls[D]
        N, K, tm, tk = self._N, self._K, self._tm, self._tk
        T = self._entries_per_part

        # Generation-aware VMEM budget: double-buffered A tile + single
        # resident x + double-buffered output tile, with headroom left for
        # compiler-internal scratch / semaphores.
        vmem_needed = 2 * tm * tk * 2 + K * D * 2 + 2 * tm * D * 4
        scoped_cap = int(_vmem_capacity_bytes() * 0.85)
        assert vmem_needed + (4 << 20) <= scoped_cap, (
            "resident-x tiling plan exceeds the VMEM budget on this TPU "
            "generation; tile the K axis instead (see TODO)."
        )
        vmem_limit = int(min(max(vmem_needed + (8 << 20), 32 << 20), scoped_cap))

        kernel = functools.partial(_aggregate_kernel, tk=tk, entries_per_part=T)

        def a_map(p, t, rows, cols, first, real):
            i = p * T + t
            return (rows[i], cols[i])

        def o_map(p, t, rows, cols, first, real):
            return (rows[p * T + t], 0)

        call = pl.pallas_call(
            kernel,
            out_shape=jax.ShapeDtypeStruct((N, D), jnp.float32),
            grid_spec=pltpu.PrefetchScalarGridSpec(
                num_scalar_prefetch=4,
                grid=(self._num_parts, T),
                in_specs=[
                    # A: gather only nonzero (tm, tk) blocks, data-dependent.
                    pl.BlockSpec((tm, tk), a_map),
                    # x: left in HBM; copied once per core into VMEM scratch.
                    pl.BlockSpec(memory_space=pl.ANY),
                ],
                out_specs=pl.BlockSpec((tm, D), o_map),
                scratch_shapes=[pltpu.VMEM((K, D), jnp.bfloat16)],
            ),
            compiler_params=pltpu.CompilerParams(
                dimension_semantics=("parallel", "arbitrary"),
                vmem_limit_bytes=vmem_limit,
            ),
        )
        self._calls[D] = call
        return call

    def __call__(self, ego_embeddings):
        return self.forward(ego_embeddings)

    def forward(self, ego_embeddings):
        K, D = ego_embeddings.shape
        assert K == self._K, "embedding rows must match graph size"
        call = self._get_call(D)
        x_bf16 = ego_embeddings.astype(jnp.bfloat16)
        out = call(self._rows, self._cols, self._first, self._real,
                   self._graph_bf16, x_bf16)
        return out.astype(ego_embeddings.dtype)


if __name__ == "__main__":
    # Small, deterministic synthetic inputs (no checkpoint / file loading).
    N = 1024  # number of graph nodes
    D = 128   # embedding (hidden) dimension
    tm = 256  # row-block tile (small here so block-sparsity is actually exercised)
    tk = 256  # k-block tile

    key = jax.random.PRNGKey(0)
    k_vals, k_mask, k_emb = jax.random.split(key, 3)

    # Deterministic banded "sparse" adjacency: edges only within |i-j| <= 96,
    # ~15% density inside the band, row-normalized (GCN-style aggregation),
    # stored dense.  Off-band (tm, tk) blocks are all-zero -> skipped entirely.
    rows_idx = jnp.arange(N)[:, None]
    cols_idx = jnp.arange(N)[None, :]
    band = (jnp.abs(rows_idx - cols_idx) <= 96).astype(jnp.float32)
    vals = jax.random.uniform(k_vals, (N, N), dtype=jnp.float32)
    keep = (jax.random.uniform(k_mask, (N, N)) < 0.15).astype(jnp.float32)
    adj = vals * keep * band
    row_sum = jnp.maximum(adj.sum(axis=1, keepdims=True), 1e-8)
    graph = adj / row_sum                                    # A_in  [N, N]

    ego_embeddings = jax.random.normal(k_emb, (N, D), dtype=jnp.float32)

    # Module construction does the one-time preprocessing; forward is cheap.
    agg = AggregatorHyp(graph, dropout=0.1, manifold=None, tm=tm, tk=tk)
    out = jax.block_until_ready(agg(ego_embeddings))

    # Reference check against plain JAX matmul (== torch.sparse.mm semantics).
    # Tolerance loosened because A and x are fed to the MXU in bfloat16.
    ref = graph @ ego_embeddings
    assert out.shape == (N, D)
    assert jnp.allclose(out, ref, atol=5e-2, rtol=5e-2), "mismatch vs reference"

    print("KERNEL_OK")
</pallas_src>

<mosaic_0001>
module attributes {stable_mosaic.version = 11 : i64} {
  func.func @_aggregate_kernel(%arg0: i32, %arg1: i32, %arg2: memref<10xi32, #tpu.memory_space<smem>>, %arg3: memref<10xi32, #tpu.memory_space<smem>>, %arg4: memref<10xi32, #tpu.memory_space<smem>>, %arg5: memref<10xi32, #tpu.memory_space<smem>>, %arg6: memref<256x256xbf16, #tpu.memory_space<vmem>>, %arg7: memref<1024x128xbf16, #tpu.memory_space<any>>, %arg8: memref<256x128xf32, #tpu.memory_space<vmem>>, %arg9: memref<1024x128xbf16, #tpu.memory_space<vmem>>) attributes {dimension_semantics = [#tpu.dimension_semantics<parallel>, #tpu.dimension_semantics<arbitrary>], iteration_bounds = array<i64: 2, 5>, scalar_prefetch = 4 : i64, scratch_operands = 1 : i64, tpu.core_type = #tpu.core_type<tc>, window_params = [{transform_indices = @transform_0, window_bounds = array<i64: 256, 256>}, {}, {transform_indices = @transform_2, window_bounds = array<i64: 256, 128>}]} {
    %c5_i32 = arith.constant 5 : i32
    %0 = arith.muli %arg0, %c5_i32 : i32
    %1 = arith.addi %0, %arg1 : i32
    %c0_i32 = arith.constant 0 : i32
    %2 = arith.cmpi eq, %arg1, %c0_i32 : i32
    %3 = arith.extui %2 : i1 to i32
    %c0_i32_0 = arith.constant 0 : i32
    %4 = arith.cmpi ne, %3, %c0_i32_0 : i32
    scf.if %4 {
      "tpu.region"() ({
        %15 = tpu.sem_alloc : memref<!tpu.dma_semaphore, #tpu.memory_space<semaphore_mem>>
        tpu.enqueue_dma source(%arg7 : memref<1024x128xbf16, #tpu.memory_space<any>>) target(%arg9 : memref<1024x128xbf16, #tpu.memory_space<vmem>>) target_semaphore(%15 : memref<!tpu.dma_semaphore, #tpu.memory_space<semaphore_mem>>)
        tpu.wait_dma2 semaphore(%15 : memref<!tpu.dma_semaphore, #tpu.memory_space<semaphore_mem>>) src(%arg7 : memref<1024x128xbf16, #tpu.memory_space<any>>) dst(%arg9 : memref<1024x128xbf16, #tpu.memory_space<vmem>>)
        tpu.yield
      }) : () -> ()
    } else {
    }
    %5 = arith.index_cast %1 : i32 to index
    %6 = memref.load %arg4[%5] : memref<10xi32, #tpu.memory_space<smem>>
    %c1_i32 = arith.constant 1 : i32
    %7 = arith.cmpi eq, %6, %c1_i32 : i32
    %8 = arith.extui %7 : i1 to i32
    %c0_i32_1 = arith.constant 0 : i32
    %9 = arith.cmpi ne, %8, %c0_i32_1 : i32
    scf.if %9 {
      %cst = arith.constant 0.000000e+00 : f32
      %15 = vector.broadcast %cst : f32 to vector<256x128xf32>
      %c0 = arith.constant 0 : index
      %c0_4 = arith.constant 0 : index
      %16 = vector.load %arg8[%c0, %c0_4] : memref<256x128xf32, #tpu.memory_space<vmem>>, vector<256x128xf32>
      tpu.vector_store %arg8[%c0, %c0_4], %15 {strides = array<i32>} : memref<256x128xf32, #tpu.memory_space<vmem>>, vector<256x128xf32>,
    } else {
    }
    %10 = arith.index_cast %1 : i32 to index
    %11 = memref.load %arg5[%10] : memref<10xi32, #tpu.memory_space<smem>>
    %c1_i32_2 = arith.constant 1 : i32
    %12 = arith.cmpi eq, %11, %c1_i32_2 : i32
    %13 = arith.extui %12 : i1 to i32
    %c0_i32_3 = arith.constant 0 : i32
    %14 = arith.cmpi ne, %13, %c0_i32_3 : i32
    scf.if %14 {
      %15 = arith.index_cast %1 : i32 to index
      %16 = memref.load %arg3[%15] : memref<10xi32, #tpu.memory_space<smem>>
      %c256_i32 = arith.constant 256 : i32
      %17 = arith.muli %16, %c256_i32 : i32
      %18 = tpu.assume_multiple %17, 256 : i32
      %c0 = arith.constant 0 : index
      %c0_4 = arith.constant 0 : index
      %19 = vector.load %arg8[%c0, %c0_4] : memref<256x128xf32, #tpu.memory_space<vmem>>, vector<256x128xf32>
      %c0_5 = arith.constant 0 : index
      %c0_6 = arith.constant 0 : index
      %20 = vector.load %arg6[%c0_5, %c0_6] : memref<256x256xbf16, #tpu.memory_space<vmem>>, vector<256x256xbf16>
      %21 = arith.index_cast %18 : i32 to index
      %c0_7 = arith.constant 0 : index
      %22 = vector.load %arg9[%21, %c0_7] : memref<1024x128xbf16, #tpu.memory_space<vmem>>, vector<256x128xbf16>
      %cst = arith.constant dense<0.000000e+00> : vector<256x128xf32>
      %23 = tpu.matmul %20, %22, %cst {dimension_numbers = #tpu.dot_dimension_numbers<[1], [0], [0], [1], [0, 0, 1, 1], [], []>} : vector<256x256xbf16>, vector<256x128xbf16>, vector<256x128xf32> -> vector<256x128xf32>
      %24 = arith.addf %19, %23 : vector<256x128xf32>
      %c0_8 = arith.constant 0 : index
      %c0_9 = arith.constant 0 : index
      %25 = vector.load %arg8[%c0_8, %c0_9] : memref<256x128xf32, #tpu.memory_space<vmem>>, vector<256x128xf32>
      tpu.vector_store %arg8[%c0_8, %c0_9], %24 {strides = array<i32>} : memref<256x128xf32, #tpu.memory_space<vmem>>, vector<256x128xf32>,
    } else {
    }
    return
  }
  func.func @transform_0(%arg0: i32, %arg1: i32, %arg2: memref<10xi32, #tpu.memory_space<smem>>, %arg3: memref<10xi32, #tpu.memory_space<smem>>, %arg4: memref<10xi32, #tpu.memory_space<smem>>, %arg5: memref<10xi32, #tpu.memory_space<smem>>) -> (i32, i32) {
    %c5_i32 = arith.constant 5 : i32
    %0 = arith.muli %arg0, %c5_i32 : i32
    %1 = arith.addi %0, %arg1 : i32
    %2 = arith.index_cast %1 : i32 to index
    %3 = memref.load %arg2[%2] : memref<10xi32, #tpu.memory_space<smem>>
    %4 = arith.index_cast %1 : i32 to index
    %5 = memref.load %arg3[%4] : memref<10xi32, #tpu.memory_space<smem>>
    %c0_i32 = arith.constant 0 : i32
    return %3, %5 : i32, i32
  }
  func.func @transform_2(%arg0: i32, %arg1: i32, %arg2: memref<10xi32, #tpu.memory_space<smem>>, %arg3: memref<10xi32, #tpu.memory_space<smem>>, %arg4: memref<10xi32, #tpu.memory_space<smem>>, %arg5: memref<10xi32, #tpu.memory_space<smem>>) -> (i32, i32) {
    %c5_i32 = arith.constant 5 : i32
    %0 = arith.muli %arg0, %c5_i32 : i32
    %1 = arith.addi %0, %arg1 : i32
    %2 = arith.index_cast %1 : i32 to index
    %3 = memref.load %arg2[%2] : memref<10xi32, #tpu.memory_space<smem>>
    %c0_i32 = arith.constant 0 : i32
    %c0_i32_0 = arith.constant 0 : i32
    return %3, %c0_i32 : i32, i32
  }
}

</mosaic_0001>

<bundles_post_ra>
// kernel: tpu_custom_call.1
= control target key start
LH: loop header
LB: loop body
LE: loop exit
PB: predicated region body
PF: predicated region fallthrough
CT: control target
= control target key end

     0   :  { %s1541_s21 = smov [#allocation4]   ;;  %s1542_s24 = smov [#allocation5]   ;;  %s2018_s0 = inlined_call_operand.hbm [shape: s32[10], index: 0, kind: input, shape index: {}]   ;;  %s2019_s4 = inlined_call_operand.hbm [shape: bf16[1024,1024], index: 4, kind: input, shape index: {}]   ;;  %s2020_s5 = inlined_call_operand.hbm [shape: bf16[1024,128], index: 5, kind: input, shape index: {}]   ;;  %s2021_s6 = inlined_call_operand.hbm [shape: f32[1024,128], index: 6, kind: output, shape index: {}]   ;;  %s2022_s1 = inlined_call_operand.hbm [shape: s32[10], index: 1, kind: input, shape index: {}]   ;;  %s2023_s2 = inlined_call_operand.hbm [shape: s32[10], index: 2, kind: input, shape index: {}]   ;;  %s2024_s3 = inlined_call_operand.hbm [shape: s32[10], index: 3, kind: input, shape index: {}]  }
   0x1   :  { %12 = dma.hbm_to_smem %s2018_s0, 16, %s1541_s21, [#allocation3] }
   0x2   :  { %14 = dma.hbm_to_smem %s2022_s1, 16, %s1542_s24, [#allocation3] }
   0x3   :  { %s1543_s27 = smov [#allocation6]   ;;  %s1544_s30 = smov [#allocation7]  }
   0x4   :  { %16 = dma.hbm_to_smem %s2023_s2, 16, %s1543_s27, [#allocation3] }
   0x5   :  { %18 = dma.hbm_to_smem %s2024_s3, 16, %s1544_s30, [#allocation3] }
   0x6   :  { %1485 = dma.done.wait [#allocation3], 64 }
   0x7   :  { %1486 = vsyncadd [#allocation3], 4294967232 }
   0x8   :  { %20 = sfence }
   0x9   :  { %21 = vsyncpa [#allocation9], 0 }
   0xa   :  { %23 = vsyncpa [#allocation9 + $0x1], 0 }
   0xb   :  { %24 = vsyncpa [#allocation10], 0 }
   0xc   :  { %26 = vsyncpa [#allocation10 + $0x1], 0  ;;  %s1601_s0 = smov 0   ;;  %s1603_s1 = smov 0  }
   0xd   :  { %s1605_s9 = smov 0   ;;  %s1607_s10 = smov 0  }
   0xe   :  { %s1609_s2 = smov 0   ;;  %s1611_s11 = smov 0  }
   0xf   :  { %s1613_s3 = smov 0   ;;  %s1615_s12 = smov 0  }
  0x10   :  { %s1617_s13 = smov 0   ;;  %s1619_s14 = smov 0  }
  0x11   :  { %s1621_s15 = smov 0  }
  0x12 LB: > { %2033 = sst [smem:[#allocation26_spill]] %s1499_s0  ;;  %s948_s16 = sadd.s32 4294967295, %s1539_s15   ;;  %s1539_s15 = sphi %s1621_s15, %s32_s15   ;;  %s1535_s14 = sphi %s1619_s14, %s2056_s14   ;;  %s1531_s13 = sphi %s1617_s13, %s2055_s13   ;;  %s1527_s12 = sphi %s1615_s12, %s2054_s12   ;;  %s1523_s3 = sphi %s1613_s3, %s2053_s3   ;;  %s1519_s11 = sphi %s1611_s11, %s2062_s11   ;;  %s1515_s2 = sphi %s1609_s2, %s2061_s2   ;;  %s1511_s10 = sphi %s1607_s10, %s2060_s10   ;;  %s1507_s9 = sphi %s1605_s9, %s2059_s9   ;;  %s1503_s1 = sphi %s1603_s1, %s2058_s1   ;;  %s1499_s0 = sphi %s1601_s0, %s2057_s0  }
  0x13   : > { %2034 = sst [smem:[#allocation27_spill]] %s1531_s13  ;;  %s41_s17 = sadd.s32 1, %s1531_s13 }
  0x14   : > { %2035 = sst [smem:[#allocation28_spill]] %s1535_s14  ;;  %p42_p0 = scmp.ge.s32.totalorder %s41_s17, 5 }
  0x15   : > { %s44_s18 = sadd.s32 1, %s1535_s14  ;;  %s949_s19 = sadd.s32 4294967294, %s1539_s15  }
  0x16   : > { %s48_s20 = smul.u32 5, %s1535_s14  ;;  %p68_p1 = scmp.ne.s32.totalorder %s1519_s11, %s1515_s2 }
  0x17   : > { %s2064_s18 = smov (!%p42_p0, %s44_s18), %s1535_s14  ;;  %s2066_s17 = smov (%p42_p0, %s41_s17), 0 }
  0x18   : > { %2036 = sst [smem:[#allocation29_spill]] %s2066_s17  ;;  %p46_p2 = scmp.ge.s32.totalorder %s2064_s18, 2 }
  0x19   : > { %s1666_s22 = sadd.s32 %s1531_s13, %s48_s20  ;;  %p69_p3 = scmp.eq.s32.totalorder %s1539_s15, 0 }
  0x1a   : > { %s50_s23 = sld [smem:[#allocation4 + %s1666_s22]]  ;;  %s2068_s18 = smov (%p46_p2, %s2064_s18), 0 }
  0x1b   : > { %2037 = sst [smem:[#allocation30_spill]] %s2068_s18  ;;  %p74_p4 = scmp.ne.s32.totalorder %s1515_s2, %s1511_s10 }
  0x1c   : > { %p75_p5 = scmp.eq.s32.totalorder %s948_s16, 0  ;;  %s51_s24 = sld [smem:[#allocation5 + %s1666_s22]] }
  0x1d   : > { %s52_s25 = smul.u32 5, %s2068_s18  ;;  %s86_s27 = sld [smem:[#allocation4 + %s1666_s22]] }
  0x1e   : > { %p1675_p6 = por %p75_p5, %p74_p4  ;;  %p103_p7 = scmp.ne.s32.totalorder %s1507_s9, %s1503_s1 }
  0x1f   : > { %s53_s28 = sadd.s32 %s52_s25, %s2066_s17  ;;  %p104_p8 = scmp.eq.s32.totalorder %s948_s16, 9 }
  0x20   : > { %s2038_s26 = scalar_select %p1675_p6, 1, 0 }
  0x21   : > { %s54_s29 = sld [smem:[#allocation4 + %s53_s28]]  ;;  %p109_p9 = scmp.ne.s32.totalorder %s1503_s1, %s1499_s0 }
  0x22   : > { %s55_s30 = sld [smem:[#allocation5 + %s53_s28]]  ;;  %p1685_p10 = por %p104_p8, %p103_p7 }
  0x23   : > { %s89_s7 = sld [smem:[#allocation4 + %s53_s28]]  ;;  %p110_p11 = scmp.eq.s32.totalorder %s949_s19, 9 }
  0x24   : > { %s2039_s8 = scalar_select %p1685_p10, 1, 0 }
  0x25   : > { %p1694_p12 = por %p69_p3, %p68_p1  ;;  %s130_s16 = sand.u32 1, %s1519_s11  }
  0x26   : > { %s93_s20 = sadd.s32 1, %s1507_s9  ;;  %p1700_p13 = por %p110_p11, %p109_p9 }
  0x27   : > { %s56_s28 = ssub.s32 %s50_s23, %s54_s29  ;;  %p1170_p0 = scmp.lt.s32.totalorder %s1539_s15, 10 }
  0x28   : > { %s2041_s25 = scalar_select %p1700_p13, 1, 0 }
  0x29   : > { %s57_s19 = ssub.s32 %s51_s24, %s55_s30  ;;  %s952_s21 = sshll.u32 %s130_s16, 8 }
  0x2a   : > { %2042 = sst [smem:[#allocation31_spill]] %s2041_s25  ;;  %s58_s18 = sor.u32 %s57_s19, %s56_s28 }
  0x2b   : > { %s90_s17 = ssub.s32 %s86_s27, %s89_s7  ;;  %p59_p1 = scmp.eq.s32.totalorder %s58_s18, 0 }
  0x2c   : > { %p91_p2 = scmp.eq.s32.totalorder %s90_s17, 0  ;;  %s2043_s13 = sadd.s32 1, %s1519_s11 }
  0x2d   : > { %s1148_s14 = scalar_select %p1694_p12, [#allocation4], [#allocation17] }
  0x2e   : > { %s1712_s0 = scalar_select %p59_p1, %s1519_s11, %s2043_s13  }
  0x2f   : > { %s1715_s25 = scalar_select %p91_p2, %s1507_s9, %s93_s20  }
  0x30   : > { %s2070_s22 = smov (!%p1694_p12, %s1666_s22), 0  ;;  %s2072_s14 = smov (!%p1170_p0, %s1148_s14), [#allocation20] }
  0x31   : > { %s2074_s22 = smov (!%p1170_p0, %s2070_s22), 0  ;;  %p1732_p3 = pnand %p1170_p0, %p1694_p12 }
  0x32   : > { %s1150_s23 = scalar_select %p1694_p12, [#allocation5], [#allocation18] }
  0x33   : > { %s137_s24 = sld [smem:[%s2072_s14 + %s2074_s22]]  ;;  %s134_s18 = scalar_lea.vmem [#allocation8], %s952_s21 }
  0x34   : > { %s2076_s23 = smov (!%p1170_p0, %s1150_s23), [#allocation21]  ;;  %s148_s27 = sshll.u32 %s134_s18, 4  ;;  %s1738_s27 = int_to_ptr.vmem [resolvable:$true] %s148_s27 }
  0x35   : > { %s138_s13 = sld [smem:[%s2076_s23 + %s2074_s22]]  ;;  %p957_p4 = scmp.ge.s32.totalorder %s1539_s15, 1 }
  0x36   : > { %p156_p5 = scmp.lt.s32.totalorder %s1539_s15, 11  ;;  %s1751_s21 = scalar_lea.sflag [#allocation9], %s130_s16 }
  0x37   : > { %p1369_p9 = pneg %p1732_p3 }
  0x38   : > { %p1740_p7 = pnand %p957_p4, %p156_p5 }
  0x39   : > { %s1018_s29 = sshll.u32 %s137_s24, 8 }
  0x3a   : > { %s2045_s30 = scalar_select %p1740_p7, 1, 0 }
  0x3b   : > { %s954_s14 = sshll.u32 %s138_s13, 1  ;;  %s1372_s13 = scalar_lea.hbm %s2019_s4, 65536 }
  0x3c   : > { %s145_s7 = sadd.s32 %s1018_s29, %s954_s14 }
  0x3d   : > { %s956_s10 = sshll.u32 %s145_s7, 6 }
  0x3e   : > { %s1747_s19 = scalar_lea.hbm %s2019_s4, %s956_s10 }
  0x3f   : > { %s1367_s22 = scalar_lea.hbm %s1747_s19, 4096  ;;  %p1373_p0 = scmp.lt.s32.totalorder %s1747_s19, %s2019_s4 }
  0x40   : > { %p1368_p8 = scmp.ne.s32.totalorder %s1747_s19, %s1367_s22  ;;  %p1374_p1 = scmp.lt.s32.totalorder %s1372_s13, %s1367_s22 }
  0x42   : > { %p1370_p11 = pnand %p1369_p9, %p1368_p8  ;;  %p1375_p2 = por %p1374_p1, %p1373_p0 }
  0x44   : > { %p1371_p12 = pneg %p1370_p11 }
  0x46   : > { %p1376_p4 = pnand %p1375_p2, %p1371_p12 }
  0x48   : > { %1379 = shalt.err (!%p1376_p4)
}
  0x49   : > { %s1380_s16 = scalar_lea.vmem %s1738_s27, 4096  ;;  %s1545_s14 = smov [#allocation8]  }
  0x4a   : > { %p1381_p5 = scmp.ne.s32.totalorder %s1738_s27, %s1380_s16  ;;  %s1385_s7 = sshll.u32 %s1545_s14, 4  ;;  %s1386_s7 = int_to_ptr.vmem [resolvable:$false] %s1385_s7 }
  0x4b   : > { %s1387_s10 = scalar_lea.vmem %s1386_s7, 8192  ;;  %p1388_p11 = scmp.lt.s32.totalorder %s1738_s27, %s1386_s7 }
  0x4c   : > { %p1383_p13 = pnand %p1381_p5, %p1369_p9  ;;  %p1389_p10 = scmp.lt.s32.totalorder %s1387_s10, %s1380_s16 }
  0x4e   : > { %p1384_p8 = pneg %p1383_p13  ;;  %p1390_p6 = por %p1389_p10, %p1388_p11 }
  0x50   : > { %p1391_p7 = pnand %p1390_p6, %p1384_p8 }
  0x52   : > { %1394 = shalt.err (!%p1391_p7)
}
  0x53   : > { %s1546_s20 = smov 512   ;;  %s1547_s28 = smov 128  }
  0x54   : > { %s1548_s22 = smov 8   ;;  %p2046_p13 = scmp.ne.s32.totalorder %s2045_s30, 0 }
  0x55   : > { %1165 = dma.hbm_to_vmem [thread:$0]  (!%p1732_p3), %s1747_s19, 4096, %s1738_s27, %s1751_s21, %s1546_s20, %s1547_s28, %s1548_s22  }
  0x56   : > { %160 = sbr.rel (%p2046_p13) target bundleno = 479 (0x1df), region = 24  ;;  %s162_s23 = sand.u32 (!%p2046_p13), 1, %s1515_s2  }
  0x57   : > { %s958_s24 = sshll.u32 (!%p2046_p13), %s162_s23, 8  ;;  %s163_s13 = scalar_lea.sflag (!%p2046_p13), [#allocation9], %s162_s23 }
  0x58   : > { %s1775_s18 = scalar_lea.vmem (!%p2046_p13), [#allocation8], %s958_s24  ;;  %p2047_p6 = scmp.ne.s32.totalorder (!%p2046_p13), %s2038_s26, 0 }
  0x5b   : > { %1488 = dma.done.wait (%p2047_p6), %s163_s13, 4096  }
  0x5c   : > { %1490 = vsyncadd (%p2047_p6), %s163_s13, 4294963200  ;;  %s182_s17 = sand.u32 1, %s1503_s1   ;;  %s196_s27 = smul.u32 5, %s1527_s12 }
  0x5d   : > { %s959_s30 = sshll.u32 %s182_s17, 8  ;;  %p960_p10 = scmp.ne.s32.totalorder %s1523_s3, 0 }
  0x5e   : > { %s1786_s19 = sadd.s32 %s1523_s3, %s196_s27  ;;  %s1788_s21 = scalar_lea.vmem [#allocation11], %s959_s30 }
  0x5f   : > { %201 = sbr.rel (%p960_p10) target bundleno = 113 (0x71), region = 32 }
  0x64   : > { %s1549_s29 = smov [#allocation2]  }
  0x65   : > { %s209_s16 = sshll.u32 %s1549_s29, 4  ;;  %s210_s16 = int_to_ptr.vmem [resolvable:$true] %s209_s16 }
  0x66   : > { %s1403_s26 = scalar_lea.vmem %s210_s16, 8192  ;;  %p1408_p7 = scmp.lt.s32.totalorder %s210_s16, %s210_s16 }
  0x67   : > { %p1404_p3 = scmp.ne.s32.totalorder %s210_s16, %s1403_s26  ;;  %p1409_p9 = scmp.lt.s32.totalorder %s1403_s26, %s1403_s26 }
  0x69   : > { %p1410_p12 = por %p1409_p9, %p1408_p7 }
  0x6b   : > { %p1411_p0 = pnand %p1410_p12, %p1404_p3 }
  0x6d   : > { %1414 = shalt.err (!%p1411_p0)  }
  0x6e   : > { %212 = dma.hbm_to_vmem [thread:$0]  %s2020_s5, 8192, %s210_s16, [#allocation12] }
  0x6f   : > { %1491 = dma.done.wait [#allocation12], 8192 }
  0x70   : > { %1492 = vsyncadd [#allocation12], 4294959104 }
  0x71 PF: > { %s217_s3 = sld [smem:[#allocation6 + %s1786_s19]] }
  0x77   : > { %p961_p1 = scmp.ne.s32.totalorder %s217_s3, 1 }
  0x79   : > { %221 = sbr.rel (%p961_p1) target bundleno = 143 (0x8f), region = 41 }
  0x7e   : > { %v1550_v0 = vmov 0.0  }
  0x7f   : > { %222 = vst [vmem:[%s1788_s21] sm:$0xff] %v1550_v0  ;;  %223 = vst [vmem:[%s1788_s21 + $0x8] sm:$0xff] %v1550_v0 }
  0x80   : > { %224 = vst [vmem:[%s1788_s21 + $0x10] sm:$0xff] %v1550_v0  ;;  %225 = vst [vmem:[%s1788_s21 + $0x18] sm:$0xff] %v1550_v0 }
  0x81   : > { %226 = vst [vmem:[%s1788_s21 + $0x20] sm:$0xff] %v1550_v0  ;;  %227 = vst [vmem:[%s1788_s21 + $0x28] sm:$0xff] %v1550_v0 }
  0x82   : > { %228 = vst [vmem:[%s1788_s21 + $0x30] sm:$0xff] %v1550_v0  ;;  %229 = vst [vmem:[%s1788_s21 + $0x38] sm:$0xff] %v1550_v0 }
  0x83   : > { %230 = vst [vmem:[%s1788_s21 + $0x40] sm:$0xff] %v1550_v0  ;;  %231 = vst [vmem:[%s1788_s21 + $0x48] sm:$0xff] %v1550_v0 }
  0x84   : > { %232 = vst [vmem:[%s1788_s21 + $0x50] sm:$0xff] %v1550_v0  ;;  %233 = vst [vmem:[%s1788_s21 + $0x58] sm:$0xff] %v1550_v0 }
  0x85   : > { %234 = vst [vmem:[%s1788_s21 + $0x60] sm:$0xff] %v1550_v0  ;;  %235 = vst [vmem:[%s1788_s21 + $0x68] sm:$0xff] %v1550_v0 }
  0x86   : > { %236 = vst [vmem:[%s1788_s21 + $0x70] sm:$0xff] %v1550_v0  ;;  %237 = vst [vmem:[%s1788_s21 + $0x78] sm:$0xff] %v1550_v0 }
  0x87   : > { %238 = vst [vmem:[%s1788_s21 + $0x80] sm:$0xff] %v1550_v0  ;;  %239 = vst [vmem:[%s1788_s21 + $0x88] sm:$0xff] %v1550_v0 }
  0x88   : > { %240 = vst [vmem:[%s1788_s21 + $0x90] sm:$0xff] %v1550_v0  ;;  %241 = vst [vmem:[%s1788_s21 + $0x98] sm:$0xff] %v1550_v0 }
  0x89   : > { %242 = vst [vmem:[%s1788_s21 + $0xa0] sm:$0xff] %v1550_v0  ;;  %243 = vst [vmem:[%s1788_s21 + $0xa8] sm:$0xff] %v1550_v0 }
  0x8a   : > { %244 = vst [vmem:[%s1788_s21 + $0xb0] sm:$0xff] %v1550_v0  ;;  %245 = vst [vmem:[%s1788_s21 + $0xb8] sm:$0xff] %v1550_v0 }
  0x8b   : > { %246 = vst [vmem:[%s1788_s21 + $0xc0] sm:$0xff] %v1550_v0  ;;  %247 = vst [vmem:[%s1788_s21 + $0xc8] sm:$0xff] %v1550_v0 }
  0x8c   : > { %248 = vst [vmem:[%s1788_s21 + $0xd0] sm:$0xff] %v1550_v0  ;;  %249 = vst [vmem:[%s1788_s21 + $0xd8] sm:$0xff] %v1550_v0 }
  0x8d   : > { %250 = vst [vmem:[%s1788_s21 + $0xe0] sm:$0xff] %v1550_v0  ;;  %251 = vst [vmem:[%s1788_s21 + $0xe8] sm:$0xff] %v1550_v0 }
  0x8e   : > { %252 = vst [vmem:[%s1788_s21 + $0xf0] sm:$0xff] %v1550_v0  ;;  %253 = vst [vmem:[%s1788_s21 + $0xf8] sm:$0xff] %v1550_v0 }
  0x8f PF: > { %s254_s7 = sld [smem:[#allocation7 + %s1786_s19]] }
  0x95   : > { %p962_p2 = scmp.ne.s32.totalorder %s254_s7, 1 }
  0x96   : > { %s259_s10 = sld [smem:[#allocation5 + %s1786_s19]] (!%p962_p2) }
  0x97   : > { %258 = sbr.rel (%p962_p2) target bundleno = 453 (0x1c5), region = 45 }
  0x9c   : > { %v1289_v1 = vld [vmem:[%s1775_s18 + $0x4] ss:$8 sps:$4 sm:$0xff]   ;;  %s963_s20 = sshll.u32 %s259_s10, 8  ;;  %v1287_v19 = vld [vmem:[%s1775_s18] ss:$8 sps:$4 sm:$0xff]  }
  0x9d   : > { %v1292_v2 = vld [vmem:[%s1775_s18 + $0x84] ss:$8 sps:$4 sm:$0xff]   ;;  %649 = vmatprep.mubr.bf16.mxu0 %v1289_v1  ;;  %s325_s28 = sshra.s32 %s963_s20, 3  ;;  %v1290_v20 = vld [vmem:[%s1775_s18 + $0x80] ss:$8 sps:$4 sm:$0xff]  }
  0x9e   : > { %713 = vmatprep.mubr.bf16.mxu1 %v1292_v2  ;;  %s964_s22 = sshll.u32 %s325_s28, 2  ;;  %v1293_v21 = vld [vmem:[%s1775_s18 + $0x14] ss:$8 sps:$4 sm:$0xff]   ;;  %v1297_v23 = vld [vmem:[%s1775_s18 + $0x10] ss:$8 sps:$4 sm:$0xff]   ;;  %v261_v51 = vld [vmem:[%s1788_s21] sm:$0xff] }
  0x9f   : > { %s1831_s23 = scalar_lea.vmem [#allocation2], %s964_s22  ;;  %v1295_v22 = vld [vmem:[%s1775_s18 + $0x94] ss:$8 sps:$4 sm:$0xff]   ;;  %v1298_v24 = vld [vmem:[%s1775_s18 + $0x90] ss:$8 sps:$4 sm:$0xff]   ;;  %v277_v53 = vld [vmem:[%s1788_s21 + $0x80] sm:$0xff] }
  0xa0   : > { %v1271_v3 = vld [vmem:[%s1831_s23 + $0x78] sm:$0xff]   ;;  %v1273_v5 = vld [vmem:[%s1831_s23 + $0x70] sm:$0xff]   ;;  %v1275_v7 = vld [vmem:[%s1831_s23 + $0x68] sm:$0xff]  }
  0xa1   : > { %v1272_v4 = vld [vmem:[%s1831_s23 + $0x38] sm:$0xff]   ;;  %1020 = vmatprep.subr.bf16.mxu0 %v1271_v3  ;;  %1132 = vmatprep.subr.bf16.mxu1 %v1271_v3  ;;  %v1274_v6 = vld [vmem:[%s1831_s23 + $0x30] sm:$0xff]   ;;  %v1276_v8 = vld [vmem:[%s1831_s23 + $0x28] sm:$0xff]  }
  0xa2   : > { %1021 = vmatpush3.bf16.msra.mxu0 %v1272_v4  ;;  %1140 = vmatpush3.bf16.msra.mxu1 %v1272_v4  ;;  %v1277_v9 = vld [vmem:[%s1831_s23 + $0x60] sm:$0xff]   ;;  %v1279_v11 = vld [vmem:[%s1831_s23 + $0x58] sm:$0xff]   ;;  %v1281_v13 = vld [vmem:[%s1831_s23 + $0x50] sm:$0xff]  }
  0xa3   : > { %1022 = vmatprep.subr.bf16.mxu0 %v1273_v5  ;;  %1133 = vmatprep.subr.bf16.mxu1 %v1273_v5  ;;  %v1278_v10 = vld [vmem:[%s1831_s23 + $0x20] sm:$0xff]   ;;  %v1280_v12 = vld [vmem:[%s1831_s23 + $0x18] sm:$0xff]   ;;  %v1282_v14 = vld [vmem:[%s1831_s23 + $0x10] sm:$0xff]  }
  0xa4   : > { %v1283_v15 = vld [vmem:[%s1831_s23 + $0x48] sm:$0xff]   ;;  %v1285_v17 = vld [vmem:[%s1831_s23 + $0x40] sm:$0xff]   ;;  %v1305_v29 = vld [vmem:[%s1775_s18 + $0x34] ss:$8 sps:$4 sm:$0xff]  }
  0xa5   : > { %v1284_v16 = vld [vmem:[%s1831_s23 + $0x8] sm:$0xff]   ;;  %v1286_v18 = vld [vmem:[%s1831_s23] sm:$0xff]   ;;  %v1307_v30 = vld [vmem:[%s1775_s18 + $0xb4] ss:$8 sps:$4 sm:$0xff]  }
  0xa6   : > { %1023 = vmatpush3.bf16.msra.mxu0 %v1274_v6  ;;  %1141 = vmatpush3.bf16.msra.mxu1 %v1274_v6  ;;  %v1299_v25 = vld [vmem:[%s1775_s18 + $0x24] ss:$8 sps:$4 sm:$0xff]   ;;  %v1303_v27 = vld [vmem:[%s1775_s18 + $0x20] ss:$8 sps:$4 sm:$0xff]   ;;  %v1309_v31 = vld [vmem:[%s1775_s18 + $0x30] ss:$8 sps:$4 sm:$0xff]  }
  0xa7   : > { %1024 = vmatprep.subr.bf16.mxu0 %v1275_v7  ;;  %1134 = vmatprep.subr.bf16.mxu1 %v1275_v7  ;;  %v1301_v26 = vld [vmem:[%s1775_s18 + $0xa4] ss:$8 sps:$4 sm:$0xff]   ;;  %v1304_v28 = vld [vmem:[%s1775_s18 + $0xa0] ss:$8 sps:$4 sm:$0xff]   ;;  %v1310_v32 = vld [vmem:[%s1775_s18 + $0xb0] ss:$8 sps:$4 sm:$0xff]  }
  0xa8   : > { %v1311_v33 = vld [vmem:[%s1775_s18 + $0x44] ss:$8 sps:$4 sm:$0xff]   ;;  %v1315_v35 = vld [vmem:[%s1775_s18 + $0x40] ss:$8 sps:$4 sm:$0xff]   ;;  %v1317_v37 = vld [vmem:[%s1775_s18 + $0x54] ss:$8 sps:$4 sm:$0xff]  }
  0xa9   : > { %v1313_v34 = vld [vmem:[%s1775_s18 + $0xc4] ss:$8 sps:$4 sm:$0xff]   ;;  %v1316_v36 = vld [vmem:[%s1775_s18 + $0xc0] ss:$8 sps:$4 sm:$0xff]   ;;  %v1319_v38 = vld [vmem:[%s1775_s18 + $0xd4] ss:$8 sps:$4 sm:$0xff]  }
  0xaa   : > { %1025 = vmatpush3.bf16.msra.mxu0 %v1276_v8  ;;  %1142 = vmatpush3.bf16.msra.mxu1 %v1276_v8  ;;  %v1321_v39 = vld [vmem:[%s1775_s18 + $0x50] ss:$8 sps:$4 sm:$0xff]   ;;  %v1323_v41 = vld [vmem:[%s1775_s18 + $0x64] ss:$8 sps:$4 sm:$0xff]   ;;  %v1327_v43 = vld [vmem:[%s1775_s18 + $0x60] ss:$8 sps:$4 sm:$0xff]  }
  0xab   : > { %1026 = vmatprep.subr.bf16.mxu0 %v1277_v9  ;;  %1135 = vmatprep.subr.bf16.mxu1 %v1277_v9  ;;  %v1322_v40 = vld [vmem:[%s1775_s18 + $0xd0] ss:$8 sps:$4 sm:$0xff]   ;;  %v1325_v42 = vld [vmem:[%s1775_s18 + $0xe4] ss:$8 sps:$4 sm:$0xff]   ;;  %v1328_v44 = vld [vmem:[%s1775_s18 + $0xe0] ss:$8 sps:$4 sm:$0xff]  }
  0xac   : > { %v1329_v45 = vld [vmem:[%s1775_s18 + $0x74] ss:$8 sps:$4 sm:$0xff]   ;;  %v1333_v47 = vld [vmem:[%s1775_s18 + $0x70] ss:$8 sps:$4 sm:$0xff]   ;;  %v262_v61 = vld [vmem:[%s1788_s21 + $0x8] sm:$0xff] }
  0xad   : > { %v1331_v46 = vld [vmem:[%s1775_s18 + $0xf4] ss:$8 sps:$4 sm:$0xff]   ;;  %v1334_v48 = vld [vmem:[%s1775_s18 + $0xf0] ss:$8 sps:$4 sm:$0xff]   ;;  %v278_v63 = vld [vmem:[%s1788_s21 + $0x88] sm:$0xff] }
  0xae   : > { %1027 = vmatpush3.bf16.msra.mxu0 %v1278_v10  ;;  %1143 = vmatpush3.bf16.msra.mxu1 %v1278_v10  ;;  %v263_v7 = vld [vmem:[%s1788_s21 + $0x10] sm:$0xff] }
  0xaf   : > { %1028 = vmatprep.subr.bf16.mxu0 %v1279_v11  ;;  %1136 = vmatprep.subr.bf16.mxu1 %v1279_v11  ;;  %v279_v9 = vld [vmem:[%s1788_s21 + $0x90] sm:$0xff] }
  0xb2   : > { %1029 = vmatpush3.bf16.msra.mxu0 %v1280_v12  ;;  %1144 = vmatpush3.bf16.msra.mxu1 %v1280_v12 }
  0xb3   : > { %1030 = vmatprep.subr.bf16.mxu0 %v1281_v13  ;;  %1137 = vmatprep.subr.bf16.mxu1 %v1281_v13 }
  0xb6   : > { %1031 = vmatpush3.bf16.msra.mxu0 %v1282_v14  ;;  %1145 = vmatpush3.bf16.msra.mxu1 %v1282_v14 }
  0xb7   : > { %1032 = vmatprep.subr.bf16.mxu0 %v1283_v15  ;;  %1138 = vmatprep.subr.bf16.mxu1 %v1283_v15 }
  0xba   : > { %1033 = vmatpush3.bf16.msra.mxu0 %v1284_v16  ;;  %1146 = vmatpush3.bf16.msra.mxu1 %v1284_v16 }
  0xbb   : > { %1034 = vmatprep.subr.bf16.mxu0 %v1285_v17  ;;  %1139 = vmatprep.subr.bf16.mxu1 %v1285_v17  ;;  %v264_v17 = vld [vmem:[%s1788_s21 + $0x18] sm:$0xff] }
  0xbe   : > { %1035 = vmatpush3.bf16.msra.mxu0 %v1286_v18  ;;  %1147 = vmatpush3.bf16.msra.mxu1 %v1286_v18 }
  0xc1   : > { %650 = vmatmul.mubr.bf16.vlgmr.msra.gmra.mxu0 %v1287_v19  ;;  %714 = vmatmul.mubr.bf16.vlgmr.msra.gmra.mxu1 %v1290_v20  ;;  %v280_v19 = vld [vmem:[%s1788_s21 + $0x98] sm:$0xff] }
  0xc2   : > { %657 = vmatprep.mubr.bf16.mxu0 %v1293_v21  ;;  %721 = vmatprep.mubr.bf16.mxu1 %v1295_v22 }
  0xc9   : > { %658 = vmatmul.mubr.bf16.gmra.mxu0 %v1297_v23  ;;  %722 = vmatmul.mubr.bf16.gmra.mxu1 %v1298_v24 }
  0xca   : > { %665 = vmatprep.mubr.bf16.mxu0 %v1299_v25  ;;  %729 = vmatprep.mubr.bf16.mxu1 %v1301_v26 }
  0xd1   : > { %666 = vmatmul.mubr.bf16.gmra.mxu0 %v1303_v27  ;;  %730 = vmatmul.mubr.bf16.gmra.mxu1 %v1304_v28  ;;  %v265_v27 = vld [vmem:[%s1788_s21 + $0x20] sm:$0xff] }
  0xd2   : > { %673 = vmatprep.mubr.bf16.mxu0 %v1305_v29  ;;  %737 = vmatprep.mubr.bf16.mxu1 %v1307_v30  ;;  %v281_v29 = vld [vmem:[%s1788_s21 + $0xa0] sm:$0xff] }
  0xd9   : > { %674 = vmatmul.mubr.bf16.gmra.mxu0 %v1309_v31  ;;  %738 = vmatmul.mubr.bf16.gmra.mxu1 %v1310_v32 }
  0xda   : > { %681 = vmatprep.mubr.bf16.mxu0 %v1311_v33  ;;  %745 = vmatprep.mubr.bf16.mxu1 %v1313_v34 }
  0xe1   : > { %682 = vmatmul.mubr.bf16.gmra.mxu0 %v1315_v35  ;;  %746 = vmatmul.mubr.bf16.gmra.mxu1 %v1316_v36 }
  0xe2   : > { %689 = vmatprep.mubr.bf16.mxu0 %v1317_v37  ;;  %753 = vmatprep.mubr.bf16.mxu1 %v1319_v38  ;;  %v266_v37 = vld [vmem:[%s1788_s21 + $0x28] sm:$0xff] }
  0xe9   : > { %690 = vmatmul.mubr.bf16.gmra.mxu0 %v1321_v39  ;;  %754 = vmatmul.mubr.bf16.gmra.mxu1 %v1322_v40  ;;  %v282_v39 = vld [vmem:[%s1788_s21 + $0xa8] sm:$0xff] }
  0xea   : > { %697 = vmatprep.mubr.bf16.mxu0 %v1323_v41  ;;  %761 = vmatprep.mubr.bf16.mxu1 %v1325_v42 }
  0xf1   : > { %698 = vmatmul.mubr.bf16.gmra.mxu0 %v1327_v43  ;;  %762 = vmatmul.mubr.bf16.gmra.mxu1 %v1328_v44 }
  0xf2   : > { %705 = vmatprep.mubr.bf16.mxu0 %v1329_v45  ;;  %769 = vmatprep.mubr.bf16.mxu1 %v1331_v46 }
  0xf9   : > { %706 = vmatmul.mubr.bf16.gmra.mxu0 %v1333_v47  ;;  %770 = vmatmul.mubr.bf16.gmra.mxu1 %v1334_v48  ;;  %v267_v47 = vld [vmem:[%s1788_s21 + $0x30] sm:$0xff] }
 0x181   : > { %v1036_v49 = vpop.f32.mrf.mxu0  ;;  %v1084_v50 = vpop.f32.mrf.mxu1 }
 0x183   : > { %v1037_v52 = vpop.f32.mrf.mxu0  ;;  %v1085_v54 = vpop.f32.mrf.mxu1 }
 0x184   : > { %v1038_v55 = vadd.f32 %v1037_v52, %v1036_v49  ;;  %v1086_v56 = vadd.f32 %v1085_v54, %v1084_v50  ;;  %v283_v49 = vld [vmem:[%s1788_s21 + $0xb0] sm:$0xff] }
 0x185   : > { %v1039_v57 = vpop.f32.mrf.mxu0  ;;  %v1087_v58 = vpop.f32.mrf.mxu1 }
 0x186   : > { %v778_v59 = vadd.f32 %v1038_v55, %v261_v51  ;;  %v794_v60 = vadd.f32 %v1086_v56, %v277_v53 }
 0x187   : > { %v1040_v62 = vpop.f32.mrf.mxu0  ;;  %v1088_v0 = vpop.f32.mrf.mxu1 }
 0x188   : > { %810 = vst [vmem:[%s1788_s21] sm:$0xff] %v778_v59  ;;  %826 = vst [vmem:[%s1788_s21 + $0x80] sm:$0xff] %v794_v60  ;;  %v1041_v1 = vadd.f32 %v1040_v62, %v1039_v57  ;;  %v1089_v2 = vadd.f32 %v1088_v0, %v1087_v58  ;;  %v268_v57 = vld [vmem:[%s1788_s21 + $0x38] sm:$0xff] }
 0x189   : > { %v1042_v3 = vpop.f32.mrf.mxu0  ;;  %v1090_v4 = vpop.f32.mrf.mxu1  ;;  %v284_v59 = vld [vmem:[%s1788_s21 + $0xb8] sm:$0xff] }
 0x18a   : > { %v779_v5 = vadd.f32 %v1041_v1, %v262_v61  ;;  %v795_v6 = vadd.f32 %v1089_v2, %v278_v63 }
 0x18b   : > { %v1043_v8 = vpop.f32.mrf.mxu0  ;;  %v1091_v10 = vpop.f32.mrf.mxu1 }
 0x18c   : > { %811 = vst [vmem:[%s1788_s21 + $0x8] sm:$0xff] %v779_v5  ;;  %827 = vst [vmem:[%s1788_s21 + $0x88] sm:$0xff] %v795_v6  ;;  %v1044_v11 = vadd.f32 %v1043_v8, %v1042_v3  ;;  %v1092_v12 = vadd.f32 %v1091_v10, %v1090_v4  ;;  %v269_v3 = vld [vmem:[%s1788_s21 + $0x40] sm:$0xff] }
 0x18d   : > { %v1045_v13 = vpop.f32.mrf.mxu0  ;;  %v1093_v14 = vpop.f32.mrf.mxu1  ;;  %v285_v5 = vld [vmem:[%s1788_s21 + $0xc0] sm:$0xff] }
 0x18e   : > { %v780_v15 = vadd.f32 %v1044_v11, %v263_v7  ;;  %v796_v16 = vadd.f32 %v1092_v12, %v279_v9 }
 0x18f   : > { %v1046_v18 = vpop.f32.mrf.mxu0  ;;  %v1094_v20 = vpop.f32.mrf.mxu1 }
 0x190   : > { %812 = vst [vmem:[%s1788_s21 + $0x10] sm:$0xff] %v780_v15  ;;  %828 = vst [vmem:[%s1788_s21 + $0x90] sm:$0xff] %v796_v16  ;;  %v1047_v21 = vadd.f32 %v1046_v18, %v1045_v13  ;;  %v1095_v22 = vadd.f32 %v1094_v20, %v1093_v14  ;;  %v270_v13 = vld [vmem:[%s1788_s21 + $0x48] sm:$0xff] }
 0x191   : > { %v1048_v23 = vpop.f32.mrf.mxu0  ;;  %v1096_v24 = vpop.f32.mrf.mxu1  ;;  %v286_v15 = vld [vmem:[%s1788_s21 + $0xc8] sm:$0xff] }
 0x192   : > { %v781_v25 = vadd.f32 %v1047_v21, %v264_v17  ;;  %v797_v26 = vadd.f32 %v1095_v22, %v280_v19 }
 0x193   : > { %v1049_v28 = vpop.f32.mrf.mxu0  ;;  %v1097_v30 = vpop.f32.mrf.mxu1 }
 0x194   : > { %813 = vst [vmem:[%s1788_s21 + $0x18] sm:$0xff] %v781_v25  ;;  %829 = vst [vmem:[%s1788_s21 + $0x98] sm:$0xff] %v797_v26  ;;  %v1050_v31 = vadd.f32 %v1049_v28, %v1048_v23  ;;  %v1098_v32 = vadd.f32 %v1097_v30, %v1096_v24  ;;  %v271_v23 = vld [vmem:[%s1788_s21 + $0x50] sm:$0xff] }
 0x195   : > { %v1051_v33 = vpop.f32.mrf.mxu0  ;;  %v1099_v34 = vpop.f32.mrf.mxu1  ;;  %v287_v25 = vld [vmem:[%s1788_s21 + $0xd0] sm:$0xff] }
 0x196   : > { %v782_v35 = vadd.f32 %v1050_v31, %v265_v27  ;;  %v798_v36 = vadd.f32 %v1098_v32, %v281_v29 }
 0x197   : > { %v1052_v38 = vpop.f32.mrf.mxu0  ;;  %v1100_v40 = vpop.f32.mrf.mxu1 }
 0x198   : > { %814 = vst [vmem:[%s1788_s21 + $0x20] sm:$0xff] %v782_v35  ;;  %830 = vst [vmem:[%s1788_s21 + $0xa0] sm:$0xff] %v798_v36  ;;  %v1053_v41 = vadd.f32 %v1052_v38, %v1051_v33  ;;  %v1101_v42 = vadd.f32 %v1100_v40, %v1099_v34  ;;  %v272_v33 = vld [vmem:[%s1788_s21 + $0x58] sm:$0xff] }
 0x199   : > { %v1054_v43 = vpop.f32.mrf.mxu0  ;;  %v1102_v44 = vpop.f32.mrf.mxu1  ;;  %v288_v35 = vld [vmem:[%s1788_s21 + $0xd8] sm:$0xff] }
 0x19a   : > { %v783_v45 = vadd.f32 %v1053_v41, %v266_v37  ;;  %v799_v46 = vadd.f32 %v1101_v42, %v282_v39 }
 0x19b   : > { %v1055_v48 = vpop.f32.mrf.mxu0  ;;  %v1103_v50 = vpop.f32.mrf.mxu1 }
 0x19c   : > { %815 = vst [vmem:[%s1788_s21 + $0x28] sm:$0xff] %v783_v45  ;;  %831 = vst [vmem:[%s1788_s21 + $0xa8] sm:$0xff] %v799_v46  ;;  %v1056_v51 = vadd.f32 %v1055_v48, %v1054_v43  ;;  %v1104_v52 = vadd.f32 %v1103_v50, %v1102_v44  ;;  %v273_v43 = vld [vmem:[%s1788_s21 + $0x60] sm:$0xff] }
 0x19d   : > { %v1057_v53 = vpop.f32.mrf.mxu0  ;;  %v1105_v54 = vpop.f32.mrf.mxu1  ;;  %v289_v45 = vld [vmem:[%s1788_s21 + $0xe0] sm:$0xff] }
 0x19e   : > { %v784_v55 = vadd.f32 %v1056_v51, %v267_v47  ;;  %v800_v56 = vadd.f32 %v1104_v52, %v283_v49 }
 0x19f   : > { %v1058_v58 = vpop.f32.mrf.mxu0  ;;  %v1106_v60 = vpop.f32.mrf.mxu1 }
 0x1a0   : > { %816 = vst [vmem:[%s1788_s21 + $0x30] sm:$0xff] %v784_v55  ;;  %832 = vst [vmem:[%s1788_s21 + $0xb0] sm:$0xff] %v800_v56  ;;  %v1059_v61 = vadd.f32 %v1058_v58, %v1057_v53  ;;  %v1107_v62 = vadd.f32 %v1106_v60, %v1105_v54  ;;  %v274_v53 = vld [vmem:[%s1788_s21 + $0x68] sm:$0xff] }
 0x1a1   : > { %v1060_v63 = vpop.f32.mrf.mxu0  ;;  %v1108_v0 = vpop.f32.mrf.mxu1  ;;  %v290_v55 = vld [vmem:[%s1788_s21 + $0xe8] sm:$0xff] }
 0x1a2   : > { %v785_v1 = vadd.f32 %v1059_v61, %v268_v57  ;;  %v801_v2 = vadd.f32 %v1107_v62, %v284_v59 }
 0x1a3   : > { %v1061_v4 = vpop.f32.mrf.mxu0  ;;  %v1109_v6 = vpop.f32.mrf.mxu1 }
 0x1a4   : > { %817 = vst [vmem:[%s1788_s21 + $0x38] sm:$0xff] %v785_v1  ;;  %833 = vst [vmem:[%s1788_s21 + $0xb8] sm:$0xff] %v801_v2  ;;  %v1062_v7 = vadd.f32 %v1061_v4, %v1060_v63  ;;  %v1110_v8 = vadd.f32 %v1109_v6, %v1108_v0  ;;  %v275_v63 = vld [vmem:[%s1788_s21 + $0x70] sm:$0xff] }
 0x1a5   : > { %v1063_v9 = vpop.f32.mrf.mxu0  ;;  %v1111_v10 = vpop.f32.mrf.mxu1  ;;  %v291_v1 = vld [vmem:[%s1788_s21 + $0xf0] sm:$0xff] }
 0x1a6   : > { %v786_v11 = vadd.f32 %v1062_v7, %v269_v3  ;;  %v802_v12 = vadd.f32 %v1110_v8, %v285_v5 }
 0x1a7   : > { %v1064_v14 = vpop.f32.mrf.mxu0  ;;  %v1112_v16 = vpop.f32.mrf.mxu1 }
 0x1a8   : > { %818 = vst [vmem:[%s1788_s21 + $0x40] sm:$0xff] %v786_v11  ;;  %834 = vst [vmem:[%s1788_s21 + $0xc0] sm:$0xff] %v802_v12  ;;  %v1065_v17 = vadd.f32 %v1064_v14, %v1063_v9  ;;  %v1113_v18 = vadd.f32 %v1112_v16, %v1111_v10  ;;  %v276_v9 = vld [vmem:[%s1788_s21 + $0x78] sm:$0xff] }
 0x1a9   : > { %v1066_v19 = vpop.f32.mrf.mxu0  ;;  %v1114_v20 = vpop.f32.mrf.mxu1  ;;  %v292_v11 = vld [vmem:[%s1788_s21 + $0xf8] sm:$0xff] }
 0x1aa   : > { %v787_v21 = vadd.f32 %v1065_v17, %v270_v13  ;;  %v803_v22 = vadd.f32 %v1113_v18, %v286_v15 }
 0x1ab   : > { %v1067_v24 = vpop.f32.mrf.mxu0  ;;  %v1115_v26 = vpop.f32.mrf.mxu1 }
 0x1ac   : > { %819 = vst [vmem:[%s1788_s21 + $0x48] sm:$0xff] %v787_v21  ;;  %835 = vst [vmem:[%s1788_s21 + $0xc8] sm:$0xff] %v803_v22  ;;  %v1068_v27 = vadd.f32 %v1067_v24, %v1066_v19  ;;  %v1116_v28 = vadd.f32 %v1115_v26, %v1114_v20 }
 0x1ad   : > { %v1069_v29 = vpop.f32.mrf.mxu0  ;;  %v1117_v30 = vpop.f32.mrf.mxu1 }
 0x1ae   : > { %v788_v31 = vadd.f32 %v1068_v27, %v271_v23  ;;  %v804_v32 = vadd.f32 %v1116_v28, %v287_v25 }
 0x1af   : > { %v1070_v34 = vpop.f32.mrf.mxu0  ;;  %v1118_v36 = vpop.f32.mrf.mxu1 }
 0x1b0   : > { %820 = vst [vmem:[%s1788_s21 + $0x50] sm:$0xff] %v788_v31  ;;  %836 = vst [vmem:[%s1788_s21 + $0xd0] sm:$0xff] %v804_v32  ;;  %v1071_v37 = vadd.f32 %v1070_v34, %v1069_v29  ;;  %v1119_v38 = vadd.f32 %v1118_v36, %v1117_v30 }
 0x1b1   : > { %v1072_v39 = vpop.f32.mrf.mxu0  ;;  %v1120_v40 = vpop.f32.mrf.mxu1 }
 0x1b2   : > { %v789_v41 = vadd.f32 %v1071_v37, %v272_v33  ;;  %v805_v42 = vadd.f32 %v1119_v38, %v288_v35 }
 0x1b3   : > { %v1073_v44 = vpop.f32.mrf.mxu0  ;;  %v1121_v46 = vpop.f32.mrf.mxu1 }
 0x1b4   : > { %821 = vst [vmem:[%s1788_s21 + $0x58] sm:$0xff] %v789_v41  ;;  %837 = vst [vmem:[%s1788_s21 + $0xd8] sm:$0xff] %v805_v42  ;;  %v1074_v47 = vadd.f32 %v1073_v44, %v1072_v39  ;;  %v1122_v48 = vadd.f32 %v1121_v46, %v1120_v40 }
 0x1b5   : > { %v1075_v49 = vpop.f32.mrf.mxu0  ;;  %v1123_v50 = vpop.f32.mrf.mxu1 }
 0x1b6   : > { %v790_v51 = vadd.f32 %v1074_v47, %v273_v43  ;;  %v806_v52 = vadd.f32 %v1122_v48, %v289_v45 }
 0x1b7   : > { %v1076_v54 = vpop.f32.mrf.mxu0  ;;  %v1124_v56 = vpop.f32.mrf.mxu1 }
 0x1b8   : > { %822 = vst [vmem:[%s1788_s21 + $0x60] sm:$0xff] %v790_v51  ;;  %838 = vst [vmem:[%s1788_s21 + $0xe0] sm:$0xff] %v806_v52  ;;  %v1077_v57 = vadd.f32 %v1076_v54, %v1075_v49  ;;  %v1125_v58 = vadd.f32 %v1124_v56, %v1123_v50 }
 0x1b9   : > { %v1078_v59 = vpop.f32.mrf.mxu0  ;;  %v1126_v60 = vpop.f32.mrf.mxu1 }
 0x1ba   : > { %v791_v61 = vadd.f32 %v1077_v57, %v274_v53  ;;  %v807_v62 = vadd.f32 %v1125_v58, %v290_v55 }
 0x1bb   : > { %v1079_v0 = vpop.f32.mrf.mxu0  ;;  %v1127_v2 = vpop.f32.mrf.mxu1 }
 0x1bc   : > { %823 = vst [vmem:[%s1788_s21 + $0x68] sm:$0xff] %v791_v61  ;;  %839 = vst [vmem:[%s1788_s21 + $0xe8] sm:$0xff] %v807_v62  ;;  %v1080_v3 = vadd.f32 %v1079_v0, %v1078_v59  ;;  %v1128_v4 = vadd.f32 %v1127_v2, %v1126_v60 }
 0x1bd   : > { %v1081_v5 = vpop.f32.mrf.mxu0  ;;  %v1129_v6 = vpop.f32.mrf.mxu1 }
 0x1be   : > { %v792_v7 = vadd.f32 %v1080_v3, %v275_v63  ;;  %v808_v8 = vadd.f32 %v1128_v4, %v291_v1 }
 0x1bf   : > { %v1082_v10 = vpop.f32.mrf.mxu0  ;;  %v1130_v12 = vpop.f32.mrf.mxu1 }
 0x1c0   : > { %824 = vst [vmem:[%s1788_s21 + $0x70] sm:$0xff] %v792_v7  ;;  %840 = vst [vmem:[%s1788_s21 + $0xf0] sm:$0xff] %v808_v8  ;;  %v1083_v13 = vadd.f32 %v1082_v10, %v1081_v5  ;;  %v1131_v14 = vadd.f32 %v1130_v12, %v1129_v6 }
 0x1c2   : > { %v793_v15 = vadd.f32 %v1083_v13, %v276_v9  ;;  %v809_v16 = vadd.f32 %v1131_v14, %v292_v11 }
 0x1c4   : > { %825 = vst [vmem:[%s1788_s21 + $0x78] sm:$0xff] %v793_v15  ;;  %841 = vst [vmem:[%s1788_s21 + $0xf8] sm:$0xff] %v809_v16 }
 0x1c5 PF: > { %p2048_p4 = scmp.ne.s32.totalorder %s2039_s8, 0  ;;  %s859_s18 = sshll.u32 %s1788_s21, 4  ;;  %s1949_s18 = int_to_ptr.vmem [resolvable:$true] %s859_s18 }
 0x1c6   : > { %s1958_s26 = scalar_lea.sflag [#allocation10], %s182_s17  ;;  %s1415_s12 = scalar_lea.vmem %s1949_s18, 4096 }
 0x1c7   : > { %s1154_s24 = scalar_select %p2048_p4, [#allocation4], [#allocation19] }
 0x1c8   : > { %s2078_s19 = smov (!%p2048_p4, %s1786_s19), 0  ;;  %p1416_p5 = scmp.ne.s32.totalorder %s1949_s18, %s1415_s12 }
 0x1c9   : > { %s852_s13 = sld [smem:[%s1154_s24 + %s2078_s19]]  ;;  %s1551_s19 = smov [#allocation11]  }
 0x1ca   : > { %p1417_p8 = pnand %p1416_p5, %p2048_p4  ;;  %s1419_s21 = sshll.u32 %s1551_s19, 4  ;;  %s1420_s21 = int_to_ptr.vmem [resolvable:$false] %s1419_s21 }
 0x1cb   : > { %s1421_s14 = scalar_lea.vmem %s1420_s21, 8192  ;;  %p1422_p13 = scmp.lt.s32.totalorder %s1949_s18, %s1420_s21 }
 0x1cc   : > { %p1418_p11 = pneg %p1417_p8  ;;  %p1423_p6 = scmp.lt.s32.totalorder %s1421_s14, %s1415_s12 }
 0x1ce   : > { %p1424_p10 = por %p1423_p6, %p1422_p13 }
 0x1cf   : > { %s1019_s27 = sshll.u32 %s852_s13, 12 }
 0x1d0   : > { %s1954_s16 = scalar_lea.hbm %s2021_s6, %s1019_s27  ;;  %p1425_p3 = pnand %p1424_p10, %p1418_p11 }
 0x1d2   : > { %1428 = shalt.err (!%p1425_p3)
}
 0x1d3   : > { %s1429_s17 = scalar_lea.hbm %s1954_s16, 4096  ;;  %s1433_s10 = scalar_lea.hbm %s2021_s6, 16384 }
 0x1d4   : > { %p1430_p7 = scmp.ne.s32.totalorder %s1954_s16, %s1429_s17  ;;  %p1434_p0 = scmp.lt.s32.totalorder %s1954_s16, %s2021_s6 }
 0x1d5   : > { %p1435_p1 = scmp.lt.s32.totalorder %s1433_s10, %s1429_s17 }
 0x1d6   : > { %p1431_p9 = pnand %p1430_p7, %p2048_p4 }
 0x1d7   : > { %p1436_p2 = por %p1435_p1, %p1434_p0 }
 0x1d8   : > { %p1432_p12 = pneg %p1431_p9 }
 0x1da   : > { %p1437_p5 = pnand %p1436_p2, %p1432_p12 }
 0x1dc   : > { %1440 = shalt.err (!%p1437_p5)
}
 0x1dd   : > { %s1552_s22 = smov 128   ;;  %s1553_s23 = smov 8  }
 0x1de   : > { %1156 = dma.vmem_to_hbm [thread:$0]  (%p2048_p4), %s1949_s18, 4096, %s1954_s16, %s1958_s26, %s1552_s22, %s1552_s22, %s1553_s23  }
 0x1df PF: > { %s2049_s24 = sld [smem:[#allocation26_spill]]  ;;  %p1171_p8 = scmp.ge.s32.totalorder %s1539_s15, 2 }
 0x1e0   : > { %s2050_s13 = sld [smem:[#allocation31_spill]] }
 0x1e5   : > { %s874_s27 = sand.u32 1, %s2049_s24  }
 0x1e6   : > { %p2051_p11 = scmp.ne.s32.totalorder %s2050_s13, 0  ;;  %s875_s30 = scalar_lea.sflag [#allocation10], %s874_s27 }
 0x1e8   : > { %p1167_p13 = pnand %p1171_p8, %p2051_p11 }
 0x1ea   : > { %p1168_p6 = pneg %p1167_p13 }
 0x1ec   : > { %1494 = dma.done.wait (%p1168_p6), %s875_s30, 4096  }
 0x1ed   : > { %1496 = vsyncadd (%p1168_p6), %s875_s30, 4294963200  ;;  %s32_s15 = sadd.s32 1, %s1539_s15   ;;  %s2052_s8 = smov %s1712_s0 }
 0x1ee   : > { %p29_p10 = scmp.ge.s32.totalorder %s32_s15, 12   ;;  %s2053_s3 = sld [smem:[#allocation27_spill]] }
 0x1ef   : > { %s2054_s12 = sld [smem:[#allocation28_spill]]  ;;  %s2057_s0 = smov %s1503_s1 }
 0x1f0   : > { %s2055_s13 = sld [smem:[#allocation29_spill]]  ;;  %s2058_s1 = smov %s1507_s9 }
 0x1f1   : > { %s2056_s14 = sld [smem:[#allocation30_spill]]  ;;  %s2059_s9 = smov %s1715_s25 }
 0x1f2   : > { %s2060_s10 = smov %s1515_s2  ;;  %s2061_s2 = smov %s1519_s11 }
 0x1f3   : > { %s2062_s11 = smov %s2052_s8  ;;  %31 = sbr.rel (!%p29_p10) target bundleno = 18 (0x12), region = 87 }
 0x1f8   :  { %880 = vsyncpa [#allocation9], 1 }
 0x1f9   :  { %882 = vsyncpa [#allocation9 + $0x1], 1 }
 0x1fa   :  { %883 = vsyncpa [#allocation10], 1 }
 0x1fb   :  { %885 = vsyncpa [#allocation10 + $0x1], 1 }

</bundles_post_ra>
